<compile_context>
chip_gen: v6e
topology: v6e:2x2x1
jax: 0.10.0
libtpu: 0.0.40
codegen_flags: <defaults>
</compile_context>

<pallas_src>
import math
import functools

import jax
import jax.numpy as jnp
from jax.experimental import pallas as pl
from jax.experimental.pallas import tpu as pltpu  # noqa: F401  (TPU backend)

# ---------------- config (small, consistent with the module) ----------------
B = 2          # batch
T = 8          # sequence length (== block_size)
D_EMBD = 32    # embedding dim
N_HEADS = 4    # heads  -> head_dim = 8
HIDDEN_MULT = 4
HIDDEN = HIDDEN_MULT * D_EMBD
LN_EPS = 1e-5
MATMUL_DTYPE = jnp.bfloat16   # MXU operand dtype; accumulation stays fp32


def _layernorm(z, g, b):
    mu = jnp.mean(z, axis=-1, keepdims=True)
    var = jnp.mean((z - mu) ** 2, axis=-1, keepdims=True)
    return (z - mu) * jax.lax.rsqrt(var + LN_EPS) * g + b


def block_kernel(x_ref,
                 ln1g_ref, ln1b_ref,
                 wqkv_ref, bqkv_ref,
                 wp_ref, bp_ref,
                 ln2g_ref, ln2b_ref,
                 w1_ref, b1_ref, w2_ref, b2_ref,
                 o_ref,
                 *, batch, seq, n_heads):
    x = x_ref[...]                                # (B*T, C) fp32, whole slab
    BT, C = x.shape
    hd = C // n_heads
    groups = n_heads * batch                      # head-major (h, b) batch axis
    scale = 1.0 / math.sqrt(hd)

    # ---- ln1 + fused QKV projection (one bf16 MXU pass, fp32 accumulate) ----
    h = _layernorm(x, ln1g_ref[...], ln1b_ref[...])
    qkv = jnp.dot(h.astype(MATMUL_DTYPE), wqkv_ref[...],
                  preferred_element_type=jnp.float32) + bqkv_ref[...]   # (BT, 3C)

    # ---- regroup ALL heads into the leading batch axis, once ----
    # (BT, 3C) -> (3C, BT) is a single 2-D minor transpose; each of q/k/v is
    # then a pure leading-dim reshape + a batched swap of the last two dims.
    qkv_t = qkv.T                                 # (3C, BT)

    def heads_to_batch(rows):                     # rows: (C, BT) -> (H*B, T, hd)
        r = rows.reshape(n_heads, hd, BT)         # pure reshape (split leading dim)
        r = jnp.swapaxes(r, -1, -2)               # (H, BT, hd): minor 2-D swap/head
        return r.reshape(groups, seq, hd)         # (H*B, T, hd): pure regroup

    q = heads_to_batch(qkv_t[0 * C:1 * C]).astype(MATMUL_DTYPE)
    k = heads_to_batch(qkv_t[1 * C:2 * C]).astype(MATMUL_DTYPE)
    v = heads_to_batch(qkv_t[2 * C:3 * C]).astype(MATMUL_DTYPE)

    # causal mask (T, T), shared (broadcast) across every (head, batch) group
    row = jax.lax.broadcasted_iota(jnp.int32, (seq, seq), 0)
    col = jax.lax.broadcasted_iota(jnp.int32, (seq, seq), 1)
    causal = row >= col
    neg_big = jnp.float32(-1e30)                  # large finite (NaN-safe) fill

    # ---- causal attention for all heads at once (leading batch = H*B) ----
    s = jnp.einsum('gtd,gsd->gts', q, k,
                   preferred_element_type=jnp.float32) * scale          # (G, T, T)
    s = jnp.where(causal, s, neg_big)
    # explicit softmax: exp on EUP, divide replaced by approx reciprocal (EUP)
    m = jnp.max(s, axis=-1, keepdims=True)
    e = jnp.exp(s - m)
    denom = jnp.sum(e, axis=-1, keepdims=True)
    p = e * pl.reciprocal(denom, approx=True)

    z = jnp.einsum('gts,gsd->gtd', p.astype(MATMUL_DTYPE), v,
                   preferred_element_type=jnp.float32)                   # (G, T, hd)

    # ---- back to (BT, C) and a SINGLE full projection against wp ----
    z_t = jnp.swapaxes(z.reshape(n_heads, BT, hd), -1, -2).reshape(C, BT)
    z2d = z_t.T                                                          # (BT, C)
    attn = jnp.dot(z2d.astype(MATMUL_DTYPE), wp_ref[...],
                   preferred_element_type=jnp.float32) + bp_ref[...]

    x1 = x + attn                                  # first residual (fp32)

    # ---- ln2 + MLP (Linear -> GELU(tanh) -> Linear) ----
    h2 = _layernorm(x1, ln2g_ref[...], ln2b_ref[...])
    mfc = jnp.dot(h2.astype(MATMUL_DTYPE), w1_ref[...],
                  preferred_element_type=jnp.float32) + b1_ref[...]
    # tanh GELU routes to the EUP slot (cheaper than exact erf on the VPU).
    # TODO(synk): switch to approximate=False if exact nn.GELU parity is required.
    act = jax.nn.gelu(mfc, approximate=True)
    mlp = jnp.dot(act.astype(MATMUL_DTYPE), w2_ref[...],
                  preferred_element_type=jnp.float32) + b2_ref[...]

    o_ref[...] = x1 + mlp                          # second residual, one dense store
    # TODO(synk): attn_drop / resid_drop / mlp Dropout treated as identity (eval).


def pack_kernel_params(p):
    """Pack/cast weights ONCE, outside the forward pass (per review): fused
    (C, 3C) QKV weight/bias, matmul weights in bf16, LN params & biases fp32."""
    wqkv = jnp.concatenate([p["wq"], p["wk"], p["wv"]], axis=1)   # (C, 3C)
    bqkv = jnp.concatenate([p["bq"], p["bk"], p["bv"]], axis=1)   # (1, 3C)
    return {
        "ln1_g": p["ln1_g"], "ln1_b": p["ln1_b"],
        "ln2_g": p["ln2_g"], "ln2_b": p["ln2_b"],
        "wqkv": wqkv.astype(MATMUL_DTYPE), "bqkv": bqkv,
        "wp": p["wp"].astype(MATMUL_DTYPE), "bp": p["bp"],
        "w1": p["w1"].astype(MATMUL_DTYPE), "b1": p["b1"],
        "w2": p["w2"].astype(MATMUL_DTYPE), "b2": p["b2"],
    }


def transformer_block(x, kp):
    """x: (B, T, C) float32. kp: pre-packed kernel params (pack_kernel_params)."""
    Bb, Tt, Cc = x.shape
    x2d = x.reshape(Bb * Tt, Cc)                  # single lane-dense 2-D slab

    kernel = functools.partial(block_kernel, batch=Bb, seq=Tt, n_heads=N_HEADS)

    # No grid: one invocation, everything (<100 KB) resident in VMEM with the
    # default full-array BlockSpecs — no per-grid-step overhead, no duplicate
    # weight DMAs.  See TODO(synk) at the top for the scaled/tiled (v7x) plan.
    out2d = pl.pallas_call(
        kernel,
        out_shape=jax.ShapeDtypeStruct((Bb * Tt, Cc), jnp.float32),
    )(x2d,
      kp["ln1_g"], kp["ln1_b"],
      kp["wqkv"], kp["bqkv"],
      kp["wp"], kp["bp"],
      kp["ln2_g"], kp["ln2_b"],
      kp["w1"], kp["b1"], kp["w2"], kp["b2"])

    return out2d.reshape(Bb, Tt, Cc)


def init_params(key):
    """Deterministic synthetic weights. Linear weights stored as (in, out), fp32."""
    ks = jax.random.split(key, 8)
    s = 0.02
    return {
        "ln1_g": jnp.ones((1, D_EMBD), jnp.float32),
        "ln1_b": jnp.zeros((1, D_EMBD), jnp.float32),
        "ln2_g": jnp.ones((1, D_EMBD), jnp.float32),
        "ln2_b": jnp.zeros((1, D_EMBD), jnp.float32),
        "wq": s * jax.random.normal(ks[0], (D_EMBD, D_EMBD), jnp.float32),
        "bq": jnp.zeros((1, D_EMBD), jnp.float32),
        "wk": s * jax.random.normal(ks[1], (D_EMBD, D_EMBD), jnp.float32),
        "bk": jnp.zeros((1, D_EMBD), jnp.float32),
        "wv": s * jax.random.normal(ks[2], (D_EMBD, D_EMBD), jnp.float32),
        "bv": jnp.zeros((1, D_EMBD), jnp.float32),
        "wp": s * jax.random.normal(ks[3], (D_EMBD, D_EMBD), jnp.float32),
        "bp": jnp.zeros((1, D_EMBD), jnp.float32),
        "w1": s * jax.random.normal(ks[4], (D_EMBD, HIDDEN), jnp.float32),
        "b1": jnp.zeros((1, HIDDEN), jnp.float32),
        "w2": s * jax.random.normal(ks[5], (HIDDEN, D_EMBD), jnp.float32),
        "b2": jnp.zeros((1, D_EMBD), jnp.float32),
    }


def reference_block(x, p):
    """Pure-JAX fp32 reference (mirrors the PyTorch module, exact-erf GELU)."""
    def ln(z, g, b):
        mu = z.mean(-1, keepdims=True)
        var = ((z - mu) ** 2).mean(-1, keepdims=True)
        return (z - mu) / jnp.sqrt(var + LN_EPS) * g[0] + b[0]

    h = ln(x, p["ln1_g"], p["ln1_b"])
    q = h @ p["wq"] + p["bq"][0]
    k = h @ p["wk"] + p["bk"][0]
    v = h @ p["wv"] + p["bv"][0]
    hd = D_EMBD // N_HEADS

    def split(z):  # (B,T,C) -> (B,H,T,hd)
        return z.reshape(B, T, N_HEADS, hd).transpose(0, 2, 1, 3)

    qh, kh, vh = split(q), split(k), split(v)
    att = (qh @ kh.transpose(0, 1, 3, 2)) / math.sqrt(hd)
    mask = jnp.tril(jnp.ones((T, T)))
    att = jnp.where(mask == 0, -jnp.inf, att)
    att = jax.nn.softmax(att, axis=-1)
    y = (att @ vh).transpose(0, 2, 1, 3).reshape(B, T, D_EMBD)
    x1 = x + (y @ p["wp"] + p["bp"][0])
    h2 = ln(x1, p["ln2_g"], p["ln2_b"])
    m = jax.nn.gelu(h2 @ p["w1"] + p["b1"][0], approximate=False) @ p["w2"] + p["b2"][0]
    return x1 + m


if __name__ == "__main__":
    key = jax.random.PRNGKey(0)
    kx, kparam = jax.random.split(key)
    x = jax.random.normal(kx, (B, T, D_EMBD), jnp.float32)
    params = init_params(kparam)
    kernel_params = pack_kernel_params(params)    # packed/cast once, not per call

    out = jax.block_until_ready(transformer_block(x, kernel_params))

    ref = reference_block(x, params)
    assert out.shape == (B, T, D_EMBD)
    # bf16 matmul operands + approx reciprocal + tanh GELU => slightly looser
    # tolerance than the fp32/exact-erf reference (anticipated by the review).
    assert jnp.allclose(out, ref, atol=5e-3, rtol=5e-3), "mismatch vs reference"
    print("KERNEL_OK")
</pallas_src>

<mosaic_0001>
module attributes {stable_mosaic.version = 11 : i64} {
  func.func @block_kernel(%arg0: memref<16x32xf32, #tpu.memory_space<vmem>>, %arg1: memref<1x32xf32, #tpu.memory_space<vmem>>, %arg2: memref<1x32xf32, #tpu.memory_space<vmem>>, %arg3: memref<32x96xbf16, #tpu.memory_space<vmem>>, %arg4: memref<1x96xf32, #tpu.memory_space<vmem>>, %arg5: memref<32x32xbf16, #tpu.memory_space<vmem>>, %arg6: memref<1x32xf32, #tpu.memory_space<vmem>>, %arg7: memref<1x32xf32, #tpu.memory_space<vmem>>, %arg8: memref<1x32xf32, #tpu.memory_space<vmem>>, %arg9: memref<32x128xbf16, #tpu.memory_space<vmem>>, %arg10: memref<1x128xf32, #tpu.memory_space<vmem>>, %arg11: memref<128x32xbf16, #tpu.memory_space<vmem>>, %arg12: memref<1x32xf32, #tpu.memory_space<vmem>>, %arg13: memref<16x32xf32, #tpu.memory_space<vmem>>) attributes {dimension_semantics = [], scalar_prefetch = 0 : i64, scratch_operands = 0 : i64, tpu.core_type = #tpu.core_type<tc>} {
    %c0 = arith.constant 0 : index
    %c0_0 = arith.constant 0 : index
    %0 = vector.load %arg0[%c0, %c0_0] : memref<16x32xf32, #tpu.memory_space<vmem>>, vector<16x32xf32>
    %c0_1 = arith.constant 0 : index
    %c0_2 = arith.constant 0 : index
    %1 = vector.load %arg1[%c0_1, %c0_2] : memref<1x32xf32, #tpu.memory_space<vmem>>, vector<1x32xf32>
    %c0_3 = arith.constant 0 : index
    %c0_4 = arith.constant 0 : index
    %2 = vector.load %arg2[%c0_3, %c0_4] : memref<1x32xf32, #tpu.memory_space<vmem>>, vector<1x32xf32>
    %cst = arith.constant dense<0.000000e+00> : vector<16xf32>
    %3 = vector.multi_reduction <add>, %0, %cst [1] : vector<16x32xf32> to vector<16xf32>
    %4 = vector.shape_cast %3 : vector<16xf32> to vector<16x1xf32>
    %cst_5 = arith.constant 3.200000e+01 : f32
    %5 = vector.broadcast %cst_5 : f32 to vector<16x1xf32>
    %6 = arith.divf %4, %5 : vector<16x1xf32>
    %7 = vector.broadcast %6 : vector<16x1xf32> to vector<16x32xf32>
    %8 = arith.subf %0, %7 : vector<16x32xf32>
    %9 = arith.mulf %8, %8 : vector<16x32xf32>
    %cst_6 = arith.constant dense<0.000000e+00> : vector<16xf32>
    %10 = vector.multi_reduction <add>, %9, %cst_6 [1] : vector<16x32xf32> to vector<16xf32>
    %11 = vector.shape_cast %10 : vector<16xf32> to vector<16x1xf32>
    %cst_7 = arith.constant 3.200000e+01 : f32
    %12 = vector.broadcast %cst_7 : f32 to vector<16x1xf32>
    %13 = arith.divf %11, %12 : vector<16x1xf32>
    %14 = vector.broadcast %6 : vector<16x1xf32> to vector<16x32xf32>
    %15 = arith.subf %0, %14 : vector<16x32xf32>
    %cst_8 = arith.constant 9.99999974E-6 : f32
    %16 = vector.broadcast %cst_8 : f32 to vector<16x1xf32>
    %17 = arith.addf %13, %16 : vector<16x1xf32>
    %18 = math.rsqrt %17 : vector<16x1xf32>
    %19 = vector.broadcast %18 : vector<16x1xf32> to vector<16x32xf32>
    %20 = arith.mulf %15, %19 : vector<16x32xf32>
    %21 = vector.broadcast %1 : vector<1x32xf32> to vector<16x32xf32>
    %22 = arith.mulf %20, %21 : vector<16x32xf32>
    %23 = vector.broadcast %2 : vector<1x32xf32> to vector<16x32xf32>
    %24 = arith.addf %22, %23 : vector<16x32xf32>
    %25 = arith.truncf %24 : vector<16x32xf32> to vector<16x32xbf16>
    %c0_9 = arith.constant 0 : index
    %c0_10 = arith.constant 0 : index
    %26 = vector.load %arg3[%c0_9, %c0_10] : memref<32x96xbf16, #tpu.memory_space<vmem>>, vector<32x96xbf16>
    %cst_11 = arith.constant dense<0.000000e+00> : vector<16x96xf32>
    %27 = tpu.matmul %25, %26, %cst_11 {dimension_numbers = #tpu.dot_dimension_numbers<[1], [0], [0], [1], [0, 0, 1, 1], [], []>} : vector<16x32xbf16>, vector<32x96xbf16>, vector<16x96xf32> -> vector<16x96xf32>
    %c0_12 = arith.constant 0 : index
    %c0_13 = arith.constant 0 : index
    %28 = vector.load %arg4[%c0_12, %c0_13] : memref<1x96xf32, #tpu.memory_space<vmem>>, vector<1x96xf32>
    %29 = vector.broadcast %28 : vector<1x96xf32> to vector<16x96xf32>
    %30 = arith.addf %27, %29 : vector<16x96xf32>
    %31 = tpu.transpose %30, [1, 0] : vector<16x96xf32> -> vector<96x16xf32>
    %32 = vector.extract_strided_slice %31 {offsets = [0, 0], sizes = [32, 16], strides = [1, 1]} : vector<96x16xf32> to vector<32x16xf32>
    %33 = vector.shape_cast %32 : vector<32x16xf32> to vector<4x8x16xf32>
    %34 = tpu.transpose %33, [0, 2, 1] : vector<4x8x16xf32> -> vector<4x16x8xf32>
    %35 = vector.shape_cast %34 : vector<4x16x8xf32> to vector<8x8x8xf32>
    %36 = arith.truncf %35 : vector<8x8x8xf32> to vector<8x8x8xbf16>
    %37 = vector.extract_strided_slice %31 {offsets = [32, 0], sizes = [32, 16], strides = [1, 1]} : vector<96x16xf32> to vector<32x16xf32>
    %38 = vector.shape_cast %37 : vector<32x16xf32> to vector<4x8x16xf32>
    %39 = tpu.transpose %38, [0, 2, 1] : vector<4x8x16xf32> -> vector<4x16x8xf32>
    %40 = vector.shape_cast %39 : vector<4x16x8xf32> to vector<8x8x8xf32>
    %41 = arith.truncf %40 : vector<8x8x8xf32> to vector<8x8x8xbf16>
    %42 = vector.extract_strided_slice %31 {offsets = [64, 0], sizes = [32, 16], strides = [1, 1]} : vector<96x16xf32> to vector<32x16xf32>
    %43 = vector.shape_cast %42 : vector<32x16xf32> to vector<4x8x16xf32>
    %44 = tpu.transpose %43, [0, 2, 1] : vector<4x8x16xf32> -> vector<4x16x8xf32>
    %45 = vector.shape_cast %44 : vector<4x16x8xf32> to vector<8x8x8xf32>
    %46 = arith.truncf %45 : vector<8x8x8xf32> to vector<8x8x8xbf16>
    %47 = tpu.iota {dimensions = array<i32: 0>} : vector<8x8xi32>
    %48 = tpu.iota {dimensions = array<i32: 1>} : vector<8x8xi32>
    %49 = arith.cmpi sge, %47, %48 : vector<8x8xi32>
    "tpu.trace_start"() <{level = 10 : i32, message = "gtd,gsd->gts"}> : () -> ()
    %cst_14 = arith.constant dense<0.000000e+00> : vector<8x8x8xf32>
    %50 = tpu.matmul %36, %41, %cst_14 {dimension_numbers = #tpu.dot_dimension_numbers<[2], [2], [1], [1], [0, 0, 0, 1, 1, 1], [0], [0]>} : vector<8x8x8xbf16>, vector<8x8x8xbf16>, vector<8x8x8xf32> -> vector<8x8x8xf32>
    "tpu.trace_stop"() : () -> ()
    %cst_15 = arith.constant 0.353553385 : f32
    %51 = vector.broadcast %cst_15 : f32 to vector<8x8x8xf32>
    %52 = arith.mulf %50, %51 : vector<8x8x8xf32>
    %cst_16 = arith.constant -1.000000e+30 : f32
    %53 = vector.shape_cast %49 : vector<8x8xi1> to vector<1x8x8xi1>
    %54 = vector.broadcast %53 : vector<1x8x8xi1> to vector<8x8x8xi1>
    %55 = vector.broadcast %cst_16 : f32 to vector<8x8x8xf32>
    %56 = arith.select %54, %52, %55 : vector<8x8x8xi1>, vector<8x8x8xf32>
    %cst_17 = arith.constant dense<0xFF800000> : vector<8x8xf32>
    %57 = vector.multi_reduction <maximumf>, %56, %cst_17 [2] : vector<8x8x8xf32> to vector<8x8xf32>
    %58 = vector.shape_cast %57 : vector<8x8xf32> to vector<8x8x1xf32>
    %59 = vector.broadcast %58 : vector<8x8x1xf32> to vector<8x8x8xf32>
    %60 = arith.subf %56, %59 : vector<8x8x8xf32>
    %61 = math.exp %60 : vector<8x8x8xf32>
    %cst_18 = arith.constant dense<0.000000e+00> : vector<8x8xf32>
    %62 = vector.multi_reduction <add>, %61, %cst_18 [2] : vector<8x8x8xf32> to vector<8x8xf32>
    %63 = vector.shape_cast %62 : vector<8x8xf32> to vector<8x8x1xf32>
    %64 = tpu.reciprocal %63 {approx = true} : vector<8x8x1xf32> -> vector<8x8x1xf32>
    %65 = vector.broadcast %64 : vector<8x8x1xf32> to vector<8x8x8xf32>
    %66 = arith.mulf %61, %65 : vector<8x8x8xf32>
    %67 = arith.truncf %66 : vector<8x8x8xf32> to vector<8x8x8xbf16>
    "tpu.trace_start"() <{level = 10 : i32, message = "gts,gsd->gtd"}> : () -> ()
    %cst_19 = arith.constant dense<0.000000e+00> : vector<8x8x8xf32>
    %68 = tpu.matmul %67, %46, %cst_19 {dimension_numbers = #tpu.dot_dimension_numbers<[2], [1], [1], [2], [0, 0, 0, 1, 1, 2], [0], [0]>} : vector<8x8x8xbf16>, vector<8x8x8xbf16>, vector<8x8x8xf32> -> vector<8x8x8xf32>
    "tpu.trace_stop"() : () -> ()
    %69 = vector.shape_cast %68 : vector<8x8x8xf32> to vector<4x16x8xf32>
    %70 = tpu.transpose %69, [0, 2, 1] : vector<4x16x8xf32> -> vector<4x8x16xf32>
    %71 = vector.shape_cast %70 : vector<4x8x16xf32> to vector<32x16xf32>
    %72 = tpu.transpose %71, [1, 0] : vector<32x16xf32> -> vector<16x32xf32>
    %73 = arith.truncf %72 : vector<16x32xf32> to vector<16x32xbf16>
    %c0_20 = arith.constant 0 : index
    %c0_21 = arith.constant 0 : index
    %74 = vector.load %arg5[%c0_20, %c0_21] : memref<32x32xbf16, #tpu.memory_space<vmem>>, vector<32x32xbf16>
    %cst_22 = arith.constant dense<0.000000e+00> : vector<16x32xf32>
    %75 = tpu.matmul %73, %74, %cst_22 {dimension_numbers = #tpu.dot_dimension_numbers<[1], [0], [0], [1], [0, 0, 1, 1], [], []>} : vector<16x32xbf16>, vector<32x32xbf16>, vector<16x32xf32> -> vector<16x32xf32>
    %c0_23 = arith.constant 0 : index
    %c0_24 = arith.constant 0 : index
    %76 = vector.load %arg6[%c0_23, %c0_24] : memref<1x32xf32, #tpu.memory_space<vmem>>, vector<1x32xf32>
    %77 = vector.broadcast %76 : vector<1x32xf32> to vector<16x32xf32>
    %78 = arith.addf %75, %77 : vector<16x32xf32>
    %79 = arith.addf %0, %78 : vector<16x32xf32>
    %c0_25 = arith.constant 0 : index
    %c0_26 = arith.constant 0 : index
    %80 = vector.load %arg7[%c0_25, %c0_26] : memref<1x32xf32, #tpu.memory_space<vmem>>, vector<1x32xf32>
    %c0_27 = arith.constant 0 : index
    %c0_28 = arith.constant 0 : index
    %81 = vector.load %arg8[%c0_27, %c0_28] : memref<1x32xf32, #tpu.memory_space<vmem>>, vector<1x32xf32>
    %cst_29 = arith.constant dense<0.000000e+00> : vector<16xf32>
    %82 = vector.multi_reduction <add>, %79, %cst_29 [1] : vector<16x32xf32> to vector<16xf32>
    %83 = vector.shape_cast %82 : vector<16xf32> to vector<16x1xf32>
    %cst_30 = arith.constant 3.200000e+01 : f32
    %84 = vector.broadcast %cst_30 : f32 to vector<16x1xf32>
    %85 = arith.divf %83, %84 : vector<16x1xf32>
    %86 = vector.broadcast %85 : vector<16x1xf32> to vector<16x32xf32>
    %87 = arith.subf %79, %86 : vector<16x32xf32>
    %88 = arith.mulf %87, %87 : vector<16x32xf32>
    %cst_31 = arith.constant dense<0.000000e+00> : vector<16xf32>
    %89 = vector.multi_reduction <add>, %88, %cst_31 [1] : vector<16x32xf32> to vector<16xf32>
    %90 = vector.shape_cast %89 : vector<16xf32> to vector<16x1xf32>
    %cst_32 = arith.constant 3.200000e+01 : f32
    %91 = vector.broadcast %cst_32 : f32 to vector<16x1xf32>
    %92 = arith.divf %90, %91 : vector<16x1xf32>
    %93 = vector.broadcast %85 : vector<16x1xf32> to vector<16x32xf32>
    %94 = arith.subf %79, %93 : vector<16x32xf32>
    %cst_33 = arith.constant 9.99999974E-6 : f32
    %95 = vector.broadcast %cst_33 : f32 to vector<16x1xf32>
    %96 = arith.addf %92, %95 : vector<16x1xf32>
    %97 = math.rsqrt %96 : vector<16x1xf32>
    %98 = vector.broadcast %97 : vector<16x1xf32> to vector<16x32xf32>
    %99 = arith.mulf %94, %98 : vector<16x32xf32>
    %100 = vector.broadcast %80 : vector<1x32xf32> to vector<16x32xf32>
    %101 = arith.mulf %99, %100 : vector<16x32xf32>
    %102 = vector.broadcast %81 : vector<1x32xf32> to vector<16x32xf32>
    %103 = arith.addf %101, %102 : vector<16x32xf32>
    %104 = arith.truncf %103 : vector<16x32xf32> to vector<16x32xbf16>
    %c0_34 = arith.constant 0 : index
    %c0_35 = arith.constant 0 : index
    %105 = vector.load %arg9[%c0_34, %c0_35] : memref<32x128xbf16, #tpu.memory_space<vmem>>, vector<32x128xbf16>
    %cst_36 = arith.constant dense<0.000000e+00> : vector<16x128xf32>
    %106 = tpu.matmul %104, %105, %cst_36 {dimension_numbers = #tpu.dot_dimension_numbers<[1], [0], [0], [1], [0, 0, 1, 1], [], []>} : vector<16x32xbf16>, vector<32x128xbf16>, vector<16x128xf32> -> vector<16x128xf32>
    %c0_37 = arith.constant 0 : index
    %c0_38 = arith.constant 0 : index
    %107 = vector.load %arg10[%c0_37, %c0_38] : memref<1x128xf32, #tpu.memory_space<vmem>>, vector<1x128xf32>
    %108 = vector.broadcast %107 : vector<1x128xf32> to vector<16x128xf32>
    %109 = arith.addf %106, %108 : vector<16x128xf32>
    %110 = arith.mulf %109, %109 : vector<16x128xf32>
    %111 = arith.mulf %109, %110 : vector<16x128xf32>
    %cst_39 = arith.constant 4.471500e-02 : f32
    %112 = vector.broadcast %cst_39 : f32 to vector<16x128xf32>
    %113 = arith.mulf %112, %111 : vector<16x128xf32>
    %114 = arith.addf %109, %113 : vector<16x128xf32>
    %cst_40 = arith.constant 0.797884583 : f32
    %115 = vector.broadcast %cst_40 : f32 to vector<16x128xf32>
    %116 = arith.mulf %115, %114 : vector<16x128xf32>
    %117 = math.tanh %116 : vector<16x128xf32>
    %cst_41 = arith.constant 1.000000e+00 : f32
    %118 = vector.broadcast %cst_41 : f32 to vector<16x128xf32>
    %119 = arith.addf %118, %117 : vector<16x128xf32>
    %cst_42 = arith.constant 5.000000e-01 : f32
    %120 = vector.broadcast %cst_42 : f32 to vector<16x128xf32>
    %121 = arith.mulf %120, %119 : vector<16x128xf32>
    %122 = arith.mulf %109, %121 : vector<16x128xf32>
    %123 = arith.truncf %122 : vector<16x128xf32> to vector<16x128xbf16>
    %c0_43 = arith.constant 0 : index
    %c0_44 = arith.constant 0 : index
    %124 = vector.load %arg11[%c0_43, %c0_44] : memref<128x32xbf16, #tpu.memory_space<vmem>>, vector<128x32xbf16>
    %cst_45 = arith.constant dense<0.000000e+00> : vector<16x32xf32>
    %125 = tpu.matmul %123, %124, %cst_45 {dimension_numbers = #tpu.dot_dimension_numbers<[1], [0], [0], [1], [0, 0, 1, 1], [], []>} : vector<16x128xbf16>, vector<128x32xbf16>, vector<16x32xf32> -> vector<16x32xf32>
    %c0_46 = arith.constant 0 : index
    %c0_47 = arith.constant 0 : index
    %126 = vector.load %arg12[%c0_46, %c0_47] : memref<1x32xf32, #tpu.memory_space<vmem>>, vector<1x32xf32>
    %127 = vector.broadcast %126 : vector<1x32xf32> to vector<16x32xf32>
    %128 = arith.addf %125, %127 : vector<16x32xf32>
    %129 = arith.addf %79, %128 : vector<16x32xf32>
    %c0_48 = arith.constant 0 : index
    %c0_49 = arith.constant 0 : index
    %130 = vector.load %arg13[%c0_48, %c0_49] : memref<16x32xf32, #tpu.memory_space<vmem>>, vector<16x32xf32>
    tpu.vector_store %arg13[%c0_48, %c0_49], %129 {strides = array<i32>} : memref<16x32xf32, #tpu.memory_space<vmem>>, vector<16x32xf32>,
    return
  }
}

</mosaic_0001>

<bundles_post_ra>
// kernel: tpu_custom_call.1
= control target key start
LH: loop header
LB: loop body
LE: loop exit
PB: predicated region body
PF: predicated region fallthrough
CT: control target
= control target key end

     0   :  { %vm50_vm0 = vcmask 261120   ;;  %s2675_s0 = inlined_call_operand.vmem [shape: f32[16,32], index: 0, kind: input, shape index: {}]   ;;  %s2676_s1 = inlined_call_operand.vmem [shape: f32[1,32], index: 1, kind: input, shape index: {}]   ;;  %s2677_s2 = inlined_call_operand.vmem [shape: f32[1,32], index: 2, kind: input, shape index: {}]   ;;  %s2678_s3 = inlined_call_operand.vmem [shape: bf16[32,96], index: 3, kind: input, shape index: {}]   ;;  %s2679_s4 = inlined_call_operand.vmem [shape: f32[1,96], index: 4, kind: input, shape index: {}]   ;;  %s2680_s5 = inlined_call_operand.vmem [shape: bf16[32,32], index: 5, kind: input, shape index: {}]   ;;  %s2681_s6 = inlined_call_operand.vmem [shape: f32[1,32], index: 6, kind: input, shape index: {}]   ;;  %s2682_s7 = inlined_call_operand.vmem [shape: f32[1,32], index: 7, kind: input, shape index: {}]   ;;  %s2683_s8 = inlined_call_operand.vmem [shape: f32[1,32], index: 8, kind: input, shape index: {}]   ;;  %s2684_s9 = inlined_call_operand.vmem [shape: bf16[32,128], index: 9, kind: input, shape index: {}]   ;;  %s2685_s10 = inlined_call_operand.vmem [shape: f32[1,128], index: 10, kind: input, shape index: {}]   ;;  %s2686_s11 = inlined_call_operand.vmem [shape: bf16[128,32], index: 11, kind: input, shape index: {}]   ;;  %s2687_s12 = inlined_call_operand.vmem [shape: f32[1,32], index: 12, kind: input, shape index: {}]   ;;  %s2688_s13 = inlined_call_operand.hbm [shape: f32[16,32], index: 13, kind: output, shape index: {}]  }
   0x1   :  { %v2388_v0 = vld [vmem:[%s2675_s0] sm:$0xff]  ;;  %v2393_v1 = vld [vmem:[%s2675_s0 + $0x8] sm:$0xff] }
   0x2   :  { %v51_v2 = vsel %vm50_vm0, %v2388_v0, 0.0  ;;  %v54_v3 = vsel %vm50_vm0, %v2393_v1, 0.0 }
   0x3   :  { %52 = vadd.xlane.f32.xlu0 %v51_v2 }
   0x7   :  { %55 = vadd.xlane.f32.xlu0 %v54_v3 }
   0x8   :  { %18 = vsyncpa [#allocation3], 0  ;;  %v2230_v14 = vld [vmem:[%s2678_s3 + $0x8] sm:$0xff]   ;;  %v2310_v15 = vmov 0.0   ;;  %vm2311_vm1 = vmmov 0   ;;  %v2231_v16 = vld [vmem:[%s2678_s3] sm:$0xff]  }
   0x9   :  { %2043 = vmatprep.subr.bf16.mxu0 %v2310_v15  ;;  %2047 = vmatprep.mubr.msk.bf16.mxu0 %vm2311_vm1, %v2310_v15  ;;  %v1952_v25 = vld [vmem:[%s2676_s1] ss:$0 sm:$0xff]  ;;  %vm607_vm2 = vcmask 64512   ;;  %vm1093_vm4 = vcmask 1043456   ;;  %s2312_s22 = smov [#allocation2]  }
   0xa   :  { %2044 = vmatpush3.bf16.msra.mxu0 %v2230_v14  ;;  %2063 = vmatprep.subr.bf16.mxu1 %v2310_v15  ;;  %v1953_v29 = vld [vmem:[%s2677_s2] ss:$0 sm:$0xff] }
   0xb   :  { %2045 = vmatprep.subr.bf16.mxu0 %v2310_v15  ;;  %2065 = vmatprep.mubr.msk.bf16.mxu1 %vm2311_vm1, %v2310_v15  ;;  %v1954_v34 = vld [vmem:[%s2679_s4] ss:$0 sm:$0xff] }
   0xe   :  { %2046 = vmatpush3.bf16.msra.mxu0 %v2231_v16 }
   0xf   :  { %2051 = vmatprep.subr.bf16.mxu0 %v2310_v15 }
  0x8c   :  { %v53_v4 = vpop.xlane.xlu0 %52 }
  0x8d   :  { %v58_v5 = vmul.f32 0.03125, %v53_v4 }
  0x8f   :  { %v60_v6 = vsub.f32 %v2388_v0, %v58_v5 }
  0x90   :  { %v56_v7 = vpop.xlane.xlu0 %55 }
  0x91   :  { %v59_v8 = vmul.f32 0.03125, %v56_v7  ;;  %v62_v9 = vmul.f32 %v60_v6, %v60_v6 }
  0x93   :  { %v61_v10 = vsub.f32 %v2393_v1, %v59_v8  ;;  %v64_v11 = vsel %vm50_vm0, %v62_v9, 0.0 }
  0x94   :  { %65 = vadd.xlane.f32.xlu1 %v64_v11 }
  0x95   :  { %v63_v12 = vmul.f32 %v61_v10, %v61_v10 }
  0x97   :  { %v67_v13 = vsel %vm50_vm0, %v63_v12, 0.0 }
  0x98   :  { %68 = vadd.xlane.f32.xlu1 %v67_v13 }
 0x11d   :  { %v66_v17 = vpop.xlane.xlu1 %65 }
 0x11e   :  { %v70_v18 = vmul.f32 0.03125, %v66_v17 }
 0x120   :  { %v72_v19 = vadd.f32 1e-05, %v70_v18 }
 0x121   :  { %v69_v20 = vpop.xlane.xlu1 %68 }
 0x122   :  { %2244 = vrsqrt.f32 %v72_v19  ;;  %v71_v21 = vmul.f32 0.03125, %v69_v20 }
 0x124   :  { %v73_v22 = vadd.f32 1e-05, %v71_v21 }
 0x126   :  { %2246 = vrsqrt.f32 %v73_v22 }
 0x12f   :  { %v2245_v23 = vpop.eup %2244 }
 0x130   :  { %v76_v24 = vmul.f32 %v2245_v23, %v60_v6 }
 0x132   :  { %v84_v28 = vmul.f32 %v1952_v25, %v76_v24 }
 0x133   :  { %v2247_v26 = vpop.eup %2246 }
 0x134   :  { %v77_v27 = vmul.f32 %v2247_v26, %v61_v10  ;;  %v92_v31 = vadd.f32 %v1953_v29, %v84_v28 }
 0x136   :  { %v85_v30 = vmul.f32 %v1952_v25, %v77_v27 }
 0x138   :  { %v93_v32 = vadd.f32 %v1953_v29, %v85_v30 }
 0x13a   :  { %v94_v33 = vpack.c.bf16 %v93_v32, %v92_v31 }
 0x13c   :  { %2048 = vmatmul.mubr.msk.bf16.vlgmr.msra.gmra.mxu0 %vm50_vm0, %v94_v33 }
 0x13d   :  { %2053 = vmatprep.mubr.msk.bf16.mxu0 %vm2311_vm1, %v2310_v15 }
 0x1fc   :  { %v155_v35 = vpop.f32.mrf.mxu0 }
 0x1fd   :  { %v156_v36 = vadd.f32 %v1954_v34, %v155_v35 }
 0x1fe   :  { %v2049_v37 = vpop.f32.mrf.mxu0 }
 0x1ff   :  { %162 = vxpose.xlu0.b32.start [1/2] (short) (narrow) %v156_v36, 96 }
 0x200   :  { %v158_v38 = vpop.f32.mrf.mxu0 }
 0x201   :  { %v159_v39 = vadd.f32 %v1954_v34, %v158_v38  ;;  %v602_v38 = vlaneseq }
 0x202   :  { %v2050_v40 = vpop.f32.mrf.mxu0 }
 0x203   :  { %163 = vxpose.xlu0.b32.end [2/2] (short) (narrow) %v159_v39, 96  ;;  %v603_v39 = vshrl.u32 %v602_v38, 7  ;;  %v605_v40 = vand.u32 127, %v602_v38 }
 0x205   :  { %vm2477_vm3 = vcmp.ge.s32.totalorder %v603_v39, %v605_v40 }
 0x27b   :  { %v178_v41 = vpop.trf.xlu0 }
 0x27c   :  { %194 = vxpose.xlu0.b32.start.end [1/1] (short) (narrow) %v178_v41, 16 }
 0x27f   :  { %v179_v42 = vpop.trf.xlu0 }
 0x283   :  { %v180_v43 = vpop.trf.xlu0 }
 0x287   :  { %v181_v44 = vpop.trf.xlu0 }
 0x28b   :  { %v182_v45 = vpop.trf.xlu0 }
 0x28c   :  { %330 = vxpose.xlu1.b32.start.end [1/1] (short) (narrow) %v182_v45, 16 }
 0x28f   :  { %v183_v46 = vpop.trf.xlu0 }
 0x291   :  { %362 = vxpose.xlu1.b32.start.end [1/1] (short) (narrow) %v183_v46, 16 }
 0x293   :  { %v184_v47 = vpop.trf.xlu0 }
 0x294   :  { %v2188_v48 = vpack.i.bf16 %v184_v47, %v179_v42 }
 0x296   :  { %2189 = vxpose.xlu1.b32.start.end [1/1] (short) (narrow) %v2188_v48, 16 }
 0x297   :  { %v185_v49 = vpop.trf.xlu0 }
 0x298   :  { %v2200_v50 = vpack.i.bf16 %v185_v49, %v180_v43 }
 0x29b   :  { %2201 = vxpose.xlu1.b32.start.end [1/1] (short) (narrow) %v2200_v50, 16  ;;  %v2429_v51 = vpop.trf.xlu0 }
 0x29f   :  { %v2431_v52 = vpop.trf.xlu0 }
 0x2a0   :  { %290 = vxpose.xlu1.b32.start.end [1/1] (short) (narrow) %v181_v44, 16 }
 0x2a3   :  { %v2433_v53 = vpop.trf.xlu0 }
 0x2a7   :  { %v2435_v54 = vpop.trf.xlu0 }
 0x2f8   :  { %v210_v59 = vpop.trf.xlu0 }
 0x2f9   :  { %v322_v61 = vpack.c.bf16 %v210_v59, %v210_v59 }
 0x2fc   :  { %v211_v5 = vpop.trf.xlu0 }
 0x2fd   :  { %v323_v7 = vpack.c.bf16 %v211_v5, %v211_v5 }
 0x308   :  { %v346_v55 = vpop.trf.xlu1 }
 0x309   :  { %v458_v56 = vpack.c.bf16 %v346_v55, %v346_v55 }
 0x30b   :  { %v612_v57 = vsel %vm607_vm2, %v458_v56, 0 }
 0x30c   :  { %2052 = vmatpush3.bf16.xpose.msra.mxu0 %v612_v57  ;;  %v347_v58 = vpop.trf.xlu1 }
 0x30d   :  { %2057 = vmatprep.subr.bf16.mxu0 %v2310_v15  ;;  %v459_v60 = vpack.c.bf16 %v347_v58, %v347_v58 }
 0x30f   :  { %v658_v2 = vsel %vm607_vm2, %v459_v60, 0 }
 0x310   :  { %v378_v62 = vpop.trf.xlu1 }
 0x311   :  { %v460_v63 = vpack.c.bf16 %v378_v62, %v378_v62 }
 0x313   :  { %2054 = vmatmul.mubr.msk.bf16.vlgmr.msra.gmra.mxu0 %vm607_vm2, %v322_v61  ;;  %v704_v3 = vsel %vm607_vm2, %v460_v63, 0 }
 0x314   :  { %v379_v4 = vpop.trf.xlu1  ;;  %2058 = vmatpush3.bf16.xpose.msra.mxu0 %v658_v2  ;;  %2064 = vmatpush3.bf16.xpose.msra.mxu1 %v704_v3 }
 0x315   :  { %2059 = vmatprep.mubr.msk.bf16.mxu0 %vm2311_vm1, %v2310_v15  ;;  %2069 = vmatprep.subr.bf16.mxu0 %v2310_v15  ;;  %v461_v6 = vpack.c.bf16 %v379_v4, %v379_v4 }
 0x316   :  { %2075 = vmatprep.subr.bf16.mxu1 %v2310_v15 }
 0x317   :  { %v750_v11 = vsel %vm607_vm2, %v461_v6, 0 }
 0x318   :  { %v2190_v8 = vpop.trf.xlu1 }
 0x319   :  { %v2194_v9 = vunpack.i.h.bf16 %v2190_v8  ;;  %v2191_v10 = vunpack.i.l.bf16 %v2190_v8 }
 0x31b   :  { %v324_v12 = vpack.c.bf16 %v2191_v10, %v2191_v10  ;;  %2060 = vmatmul.mubr.msk.bf16.vlgmr.msra.gmra.mxu0 %vm607_vm2, %v323_v7  ;;  %v462_v13 = vpack.c.bf16 %v2194_v9, %v2194_v9 }
 0x31c   :  { %2070 = vmatpush3.bf16.xpose.msra.mxu0 %v750_v11  ;;  %v2195_v14 = vpop.trf.xlu1  ;;  %2071 = vmatprep.mubr.msk.bf16.mxu0 %vm2311_vm1, %v2310_v15 }
 0x31d   :  { %2066 = vmatmul.mubr.msk.bf16.vlgmr.msra.gmra.mxu1 %vm607_vm2, %v324_v12  ;;  %v2199_v16 = vunpack.i.h.bf16 %v2195_v14  ;;  %v2196_v17 = vunpack.i.l.bf16 %v2195_v14  ;;  %2081 = vmatprep.subr.bf16.mxu0 %v2310_v15  ;;  %v796_v18 = vsel %vm607_vm2, %v462_v13, 0 }
 0x31e   :  { %2077 = vmatprep.mubr.msk.bf16.mxu1 %vm2311_vm1, %v2310_v15  ;;  %2076 = vmatpush3.bf16.xpose.msra.mxu1 %v796_v18 }
 0x31f   :  { %v325_v19 = vpack.c.bf16 %v2196_v17, %v2196_v17  ;;  %v463_v20 = vpack.c.bf16 %v2199_v16, %v2199_v16  ;;  %2087 = vmatprep.subr.bf16.mxu1 %v2310_v15 }
 0x320   :  { %v2202_v21 = vpop.trf.xlu1 }
 0x321   :  { %v2206_v22 = vunpack.i.h.bf16 %v2202_v21  ;;  %v2203_v23 = vunpack.i.l.bf16 %v2202_v21  ;;  %v842_v24 = vsel %vm607_vm2, %v463_v20, 0 }
 0x323   :  { %v326_v25 = vpack.c.bf16 %v2203_v23, %v2203_v23  ;;  %2072 = vmatmul.mubr.msk.bf16.vlgmr.msra.gmra.mxu0 %vm607_vm2, %v325_v19  ;;  %v464_v26 = vpack.c.bf16 %v2206_v22, %v2206_v22 }
 0x324   :  { %2082 = vmatpush3.bf16.xpose.msra.mxu0 %v842_v24  ;;  %v2207_v27 = vpop.trf.xlu1  ;;  %2083 = vmatprep.mubr.msk.bf16.mxu0 %vm2311_vm1, %v2310_v15 }
 0x325   :  { %v2211_v28 = vunpack.i.h.bf16 %v2207_v27  ;;  %v2208_v29 = vunpack.i.l.bf16 %v2207_v27  ;;  %2093 = vmatprep.subr.bf16.mxu0 %v2310_v15  ;;  %2078 = vmatmul.mubr.msk.bf16.vlgmr.msra.gmra.mxu1 %vm607_vm2, %v326_v25  ;;  %v888_v30 = vsel %vm607_vm2, %v464_v26, 0 }
 0x326   :  { %2088 = vmatpush3.bf16.xpose.msra.mxu1 %v888_v30  ;;  %2089 = vmatprep.mubr.msk.bf16.mxu1 %vm2311_vm1, %v2310_v15 }
 0x327   :  { %v327_v31 = vpack.c.bf16 %v2208_v29, %v2208_v29  ;;  %v465_v32 = vpack.c.bf16 %v2211_v28, %v2211_v28  ;;  %2099 = vmatprep.subr.bf16.mxu1 %v2310_v15 }
 0x328   :  { %v306_v33 = vpop.trf.xlu1 }
 0x329   :  { %v934_v34 = vsel %vm607_vm2, %v465_v32, 0  ;;  %v328_v35 = vpack.c.bf16 %v306_v33, %v306_v33 }
 0x32b   :  { %2084 = vmatmul.mubr.msk.bf16.vlgmr.msra.gmra.mxu0 %vm607_vm2, %v327_v31 }
 0x32c   :  { %2094 = vmatpush3.bf16.xpose.msra.mxu0 %v934_v34  ;;  %v307_v36 = vpop.trf.xlu1  ;;  %2095 = vmatprep.mubr.msk.bf16.mxu0 %vm2311_vm1, %v2310_v15 }
 0x32d   :  { %2105 = vmatprep.subr.bf16.mxu0 %v2310_v15  ;;  %2090 = vmatmul.mubr.msk.bf16.vlgmr.msra.gmra.mxu1 %vm607_vm2, %v328_v35  ;;  %v329_v37 = vpack.c.bf16 %v307_v36, %v307_v36 }
 0x32e   :  { %2101 = vmatprep.mubr.msk.bf16.mxu1 %vm2311_vm1, %v2310_v15 }
 0x333   :  { %2096 = vmatmul.mubr.msk.bf16.vlgmr.msra.gmra.mxu0 %vm607_vm2, %v329_v37 }
 0x334   :  { %2107 = vmatprep.mubr.msk.bf16.mxu0 %vm2311_vm1, %v2310_v15 }
 0x3d3   :  { %v648_v41 = vpop.f32.mrf.mxu0 }
 0x3d4   :  { %v976_v43 = vmul.f32 0.35355338, %v648_v41 }
 0x3d5   :  { %v2055_v44 = vpop.f32.mrf.mxu0 }
 0x3d6   :  { %v2483_v45 = vsel %vm2477_vm3, %v976_v43, -1e+30 }
 0x3d7   :  { %v651_v46 = vpop.f32.mrf.mxu0  ;;  %v994_v47 = vsel %vm607_vm2, %v2483_v45, -inf }
 0x3d8   :  { %995 = vmax.xlane.f32.xlu1 %v994_v47 }
 0x3d9   :  { %v2056_v48 = vpop.f32.mrf.mxu0 }
 0x3db   :  { %v694_v49 = vpop.f32.mrf.mxu0 }
 0x3dc   :  { %v977_v50 = vmul.f32 0.35355338, %v694_v49 }
 0x3dd   :  { %v2061_v55 = vpop.f32.mrf.mxu0  ;;  %v740_v56 = vpop.f32.mrf.mxu1 }
 0x3de   :  { %v978_v57 = vmul.f32 0.35355338, %v740_v56  ;;  %v987_v58 = vsel %vm2477_vm3, %v977_v50, -1e+30 }
 0x3df   :  { %v697_v59 = vpop.f32.mrf.mxu0  ;;  %v2067_v60 = vpop.f32.mrf.mxu1  ;;  %v997_v61 = vsel %vm607_vm2, %v987_v58, -inf }
 0x3e0   :  { %998 = vmax.xlane.f32.xlu0 %v997_v61  ;;  %v988_v62 = vsel %vm2477_vm3, %v978_v57, -1e+30 }
 0x3e1   :  { %v2062_v63 = vpop.f32.mrf.mxu0  ;;  %v743_v2 = vpop.f32.mrf.mxu1  ;;  %v1000_v3 = vsel %vm607_vm2, %v988_v62, -inf }
 0x3e2   :  { %1001 = vmax.xlane.f32.xlu1 %v1000_v3 }
 0x3e3   :  { %v2068_v4 = vpop.f32.mrf.mxu1  ;;  %v786_v5 = vpop.f32.mrf.mxu0 }
 0x3e4   :  { %v979_v6 = vmul.f32 0.35355338, %v786_v5 }
 0x3e5   :  { %v2073_v7 = vpop.f32.mrf.mxu0  ;;  %v832_v8 = vpop.f32.mrf.mxu1 }
 0x3e6   :  { %v989_v9 = vsel %vm2477_vm3, %v979_v6, -1e+30  ;;  %v980_v11 = vmul.f32 0.35355338, %v832_v8 }
 0x3e7   :  { %v789_v10 = vpop.f32.mrf.mxu0  ;;  %v1003_v12 = vsel %vm607_vm2, %v989_v9, -inf  ;;  %v2079_v13 = vpop.f32.mrf.mxu1 }
 0x3e8   :  { %1004 = vmax.xlane.f32.xlu1 %v1003_v12  ;;  %v990_v16 = vsel %vm2477_vm3, %v980_v11, -1e+30 }
 0x3e9   :  { %v2074_v14 = vpop.f32.mrf.mxu0  ;;  %v835_v17 = vpop.f32.mrf.mxu1  ;;  %v1006_v18 = vsel %vm607_vm2, %v990_v16, -inf }
 0x3eb   :  { %v878_v19 = vpop.f32.mrf.mxu0  ;;  %v2080_v21 = vpop.f32.mrf.mxu1 }
 0x3ec   :  { %v981_v20 = vmul.f32 0.35355338, %v878_v19  ;;  %1007 = vmax.xlane.f32.xlu1 %v1006_v18 }
 0x3ed   :  { %v2085_v22 = vpop.f32.mrf.mxu0  ;;  %v924_v23 = vpop.f32.mrf.mxu1 }
 0x3ee   :  { %v2501_v24 = vsel %vm2477_vm3, %v981_v20, -1e+30  ;;  %v982_v26 = vmul.f32 0.35355338, %v924_v23 }
 0x3ef   :  { %v881_v25 = vpop.f32.mrf.mxu0  ;;  %v1009_v27 = vsel %vm607_vm2, %v2501_v24, -inf  ;;  %v2091_v28 = vpop.f32.mrf.mxu1 }
 0x3f0   :  { %1010 = vmax.xlane.f32.xlu1 %v1009_v27  ;;  %v992_v30 = vsel %vm2477_vm3, %v982_v26, -1e+30 }
 0x3f1   :  { %v2086_v29 = vpop.f32.mrf.mxu0  ;;  %v1012_v31 = vsel %vm607_vm2, %v992_v30, -inf  ;;  %v927_v32 = vpop.f32.mrf.mxu1 }
 0x3f3   :  { %v970_v33 = vpop.f32.mrf.mxu0  ;;  %v2092_v35 = vpop.f32.mrf.mxu1 }
 0x3f4   :  { %v983_v34 = vmul.f32 0.35355338, %v970_v33  ;;  %1013 = vmax.xlane.f32.xlu1 %v1012_v31 }
 0x3f5   :  { %v2097_v36 = vpop.f32.mrf.mxu0 }
 0x3f6   :  { %v993_v37 = vsel %vm2477_vm3, %v983_v34, -1e+30 }
 0x3f7   :  { %v1015_v38 = vsel %vm607_vm2, %v993_v37, -inf  ;;  %v973_v39 = vpop.f32.mrf.mxu0 }
 0x3f8   :  { %1016 = vmax.xlane.f32.xlu1 %v1015_v38 }
 0x3f9   :  { %v2098_v40 = vpop.f32.mrf.mxu0 }
 0x461   :  { %v996_v41 = vpop.xlane.xlu1 %995 }
 0x462   :  { %v1018_v43 = vsub.f32 %v2483_v45, %v996_v41 }
 0x464   :  { %v1026_v44 = vmul.f32 1.442695, %v1018_v43 }
 0x466   :  { %2248 = vpow2.f32 %v1026_v44 }
 0x469   :  { %v999_v46 = vpop.xlane.xlu0 %998 }
 0x46a   :  { %v1019_v47 = vsub.f32 %v987_v58, %v999_v46 }
 0x46b   :  { %v1002_v48 = vpop.xlane.xlu1 %1001 }
 0x46c   :  { %v1028_v49 = vmul.f32 1.442695, %v1019_v47  ;;  %v1020_v50 = vsub.f32 %v988_v62, %v1002_v48 }
 0x46e   :  { %2250 = vpow2.f32 %v1028_v49  ;;  %v1030_v55 = vmul.f32 1.442695, %v1020_v50 }
 0x470   :  { %2252 = vpow2.f32 %v1030_v55 }
 0x471   :  { %v1005_v42 = vpop.xlane.xlu1 %1004 }
 0x472   :  { %v1021_v56 = vsub.f32 %v989_v9, %v1005_v42 }
 0x473   :  { %v2249_v57 = vpop.eup %2248 }
 0x474   :  { %v1032_v59 = vmul.f32 1.442695, %v1021_v56  ;;  %v1042_v60 = vsel %vm607_vm2, %v2249_v57, 0.0 }
 0x475   :  { %v1008_v61 = vpop.xlane.xlu1 %1007  ;;  %1043 = vadd.xlane.f32.xlu1 %v1042_v60 }
 0x476   :  { %2254 = vpow2.f32 %v1032_v59  ;;  %v1022_v45 = vsub.f32 %v990_v16, %v1008_v61 }
 0x478   :  { %v1034_v63 = vmul.f32 1.442695, %v1022_v45 }
 0x479   :  { %v1011_v2 = vpop.xlane.xlu1 %1010 }
 0x47a   :  { %2256 = vpow2.f32 %v1034_v63  ;;  %v1023_v14 = vsub.f32 %v2501_v24, %v1011_v2 }
 0x47b   :  { %v2251_v58 = vpop.eup %2250 }
 0x47c   :  { %v1045_v3 = vsel %vm607_vm2, %v2251_v58, 0.0  ;;  %v1036_v17 = vmul.f32 1.442695, %v1023_v14 }
 0x47d   :  { %v2514_v62 = vpop.eup %2252  ;;  %1046 = vadd.xlane.f32.xlu0 %v1045_v3  ;;  %v1014_v4 = vpop.xlane.xlu1 %1013 }
 0x47e   :  { %v1024_v5 = vsub.f32 %v992_v30, %v1014_v4  ;;  %v1048_v6 = vsel %vm607_vm2, %v2514_v62, 0.0 }
 0x47f   :  { %1049 = vadd.xlane.f32.xlu1 %v1048_v6 }
 0x480   :  { %v1038_v7 = vmul.f32 1.442695, %v1024_v5 }
 0x481   :  { %v1017_v16 = vpop.xlane.xlu1 %1016 }
 0x482   :  { %2258 = vpow2.f32 %v1038_v7  ;;  %v1025_v18 = vsub.f32 %v993_v37, %v1017_v16 }
 0x483   :  { %v2518_v8 = vpop.eup %2254  ;;  %2260 = vpow2.f32 %v1036_v17 }
 0x484   :  { %v1051_v9 = vsel %vm607_vm2, %v2518_v8, 0.0  ;;  %v1040_v19 = vmul.f32 1.442695, %v1025_v18 }
 0x485   :  { %1052 = vadd.xlane.f32.xlu0 %v1051_v9 }
 0x486   :  { %2262 = vpow2.f32 %v1040_v19 }
 0x487   :  { %v2522_v10 = vpop.eup %2256 }
 0x488   :  { %v1054_v11 = vsel %vm607_vm2, %v2522_v10, 0.0 }
 0x489   :  { %1055 = vadd.xlane.f32.xlu1 %v1054_v11 }
 0x48f   :  { %v2526_v12 = vpop.eup %2258 }
 0x490   :  { %v1060_v13 = vsel %vm607_vm2, %v2526_v12, 0.0  ;;  %v2533_v20 = vpop.eup %2260 }
 0x491   :  { %1061 = vadd.xlane.f32.xlu1 %v1060_v13  ;;  %v1057_v21 = vsel %vm607_vm2, %v2533_v20, 0.0 }
 0x493   :  { %v2537_v22 = vpop.eup %2262 }
 0x4b2   :  { %498 = vxpose.xlu0.b32.start.end [1/1] (short) (narrow) %v2431_v52, 16  ;;  %v1063_v52 = vsel %vm607_vm2, %v2537_v22, 0.0 }
 0x4c4   :  { %466 = vxpose.xlu1.b32.start.end [1/1] (short) (narrow) %v2429_v51, 16 }
 0x4e3   :  { %1058 = vadd.xlane.f32.xlu0 %v1057_v21 }
 0x4e7   :  { %1064 = vadd.xlane.f32.xlu0 %v1063_v52 }
 0x4fe   :  { %v1044_v51 = vpop.xlane.xlu1 %1043 }
 0x4ff   :  { %2264 = vrcp.f32 %v1044_v51 }
 0x506   :  { %v1047_v23 = vpop.xlane.xlu0 %1046 }
 0x507   :  { %2266 = vrcp.f32 %v1047_v23 }
 0x508   :  { %v1050_v24 = vpop.xlane.xlu1 %1049 }
 0x509   :  { %2268 = vrcp.f32 %v1050_v24 }
 0x50c   :  { %v2265_v29 = vpop.eup %2264 }
 0x50d   :  { %v1074_v31 = vmul.f32 %v2265_v29, %v2249_v57 }
 0x50e   :  { %v1053_v25 = vpop.xlane.xlu0 %1052 }
 0x50f   :  { %2270 = vrcp.f32 %v1053_v25  ;;  %v1082_v36 = vpack.c.bf16 %v1074_v31, %v1074_v31 }
 0x512   :  { %v1056_v26 = vpop.xlane.xlu1 %1055 }
 0x513   :  { %2272 = vrcp.f32 %v1056_v26 }
 0x514   :  { %530 = vxpose.xlu0.b32.start.end [1/1] (short) (narrow) %v2433_v53, 16  ;;  %v2267_v53 = vpop.eup %2266 }
 0x515   :  { %v1075_v39 = vmul.f32 %v2267_v53, %v2251_v58 }
 0x516   :  { %v2269_v41 = vpop.eup %2268 }
 0x517   :  { %v1083_v44 = vpack.c.bf16 %v1075_v39, %v1075_v39  ;;  %v1076_v47 = vmul.f32 %v2269_v41, %v2514_v62 }
 0x519   :  { %562 = vxpose.xlu0.b32.start.end [1/1] (short) (narrow) %v2435_v54, 16  ;;  %v1084_v49 = vpack.c.bf16 %v1076_v47, %v1076_v47 }
 0x51a   :  { %v1062_v27 = vpop.xlane.xlu1 %1061 }
 0x51c   :  { %v2271_v48 = vpop.eup %2270 }
 0x51d   :  { %v1077_v50 = vmul.f32 %v2271_v48, %v2518_v8 }
 0x51f   :  { %v1085_v55 = vpack.c.bf16 %v1077_v50, %v1077_v50 }
 0x520   :  { %v2273_v57 = vpop.eup %2272 }
 0x521   :  { %v1078_v61 = vmul.f32 %v2273_v57, %v2522_v10 }
 0x523   :  { %v1086_v3 = vpack.c.bf16 %v1078_v61, %v1078_v61  ;;  %v2233_v61 = vld [vmem:[%s2680_s5] sm:$0xff]  }
 0x52e   :  { %v514_v28 = vpop.trf.xlu0 }
 0x52f   :  { %v596_v33 = vpack.c.bf16 %v514_v28, %v514_v28 }
 0x531   :  { %v1187_v38 = vsel %vm1093_vm4, %v596_v33, 0 }
 0x532   :  { %v515_v34 = vpop.trf.xlu0 }
 0x533   :  { %v597_v40 = vpack.c.bf16 %v515_v34, %v515_v34 }
 0x535   :  { %v1233_v46 = vsel %vm1093_vm4, %v597_v40, 0 }
 0x540   :  { %v482_v30 = vpop.trf.xlu1 }
 0x541   :  { %v594_v32 = vpack.c.bf16 %v482_v30, %v482_v30 }
 0x543   :  { %v1095_v54 = vsel %vm1093_vm4, %v594_v32, 0 }
 0x544   :  { %2100 = vmatpush3.bf16.msra.mxu1 %v1095_v54  ;;  %v483_v35 = vpop.trf.xlu1 }
 0x545   :  { %v595_v37 = vpack.c.bf16 %v483_v35, %v483_v35  ;;  %2111 = vmatprep.subr.bf16.mxu1 %v2310_v15 }
 0x547   :  { %v1141_v43 = vsel %vm1093_vm4, %v595_v37, 0  ;;  %2102 = vmatmul.mubr.msk.bf16.vlgmr.msra.gmra.mxu1 %vm607_vm2, %v1082_v36 }
 0x548   :  { %2106 = vmatpush3.bf16.msra.mxu0 %v1141_v43  ;;  %2112 = vmatpush3.bf16.msra.mxu1 %v1187_v38 }
 0x549   :  { %2113 = vmatprep.mubr.msk.bf16.mxu1 %vm2311_vm1, %v2310_v15  ;;  %2117 = vmatprep.subr.bf16.mxu0 %v2310_v15 }
 0x54a   :  { %2123 = vmatprep.subr.bf16.mxu1 %v2310_v15 }
 0x54b   :  { %2108 = vmatmul.mubr.msk.bf16.vlgmr.msra.gmra.mxu0 %vm607_vm2, %v1083_v44 }
 0x54c   :  { %2118 = vmatpush3.bf16.msra.mxu0 %v1233_v46  ;;  %2119 = vmatprep.mubr.msk.bf16.mxu0 %vm2311_vm1, %v2310_v15 }
 0x54d   :  { %2129 = vmatprep.subr.bf16.mxu0 %v2310_v15 }
 0x54f   :  { %2114 = vmatmul.mubr.msk.bf16.vlgmr.msra.gmra.mxu1 %vm607_vm2, %v1084_v49 }
 0x550   :  { %2125 = vmatprep.mubr.msk.bf16.mxu1 %vm2311_vm1, %v2310_v15 }
 0x553   :  { %2120 = vmatmul.mubr.msk.bf16.vlgmr.msra.gmra.mxu0 %vm607_vm2, %v1085_v55  ;;  %v2232_v55 = vld [vmem:[%s2680_s5 + $0x8] sm:$0xff]   ;;  %s1941_s5 = sshll.u32 %s2312_s22, 4  ;;  %s1942_s5 = int_to_ptr.vmem [resolvable:$true] %s1941_s5 }
 0x554   :  { %2131 = vmatprep.mubr.msk.bf16.mxu0 %vm2311_vm1, %v2310_v15  ;;  %p2293_p1 = scmp.lt.s32.totalorder %s1942_s5, %s1942_s5 }
 0x56c   :  { %v1059_v42 = vpop.xlane.xlu0 %1058 }
 0x56d   :  { %2274 = vrcp.f32 %v1059_v42 }
 0x56e   :  { %2276 = vrcp.f32 %v1062_v27 }
 0x570   :  { %v1065_v56 = vpop.xlane.xlu0 %1064 }
 0x571   :  { %2278 = vrcp.f32 %v1065_v56 }
 0x57a   :  { %v2275_v45 = vpop.eup %2274 }
 0x57b   :  { %v1079_v62 = vmul.f32 %v2275_v45, %v2533_v20  ;;  %v2277_v4 = vpop.eup %2276 }
 0x57c   :  { %v1080_v9 = vmul.f32 %v2277_v4, %v2526_v12  ;;  %v1974_v4 = vld [vmem:[%s2681_s6] ss:$0 sm:$0xff]  ;;  %s2288_s6 = scalar_lea.vmem %s1942_s5, 256 }
 0x57d   :  { %v1087_v8 = vpack.c.bf16 %v1079_v62, %v1079_v62  ;;  %p2289_p0 = scmp.ne.s32.totalorder %s1942_s5, %s2288_s6  ;;  %p2294_p2 = scmp.lt.s32.totalorder %s2288_s6, %s2288_s6 }
 0x57e   :  { %v2279_v10 = vpop.eup %2278  ;;  %v1088_v16 = vpack.c.bf16 %v1080_v9, %v1080_v9 }
 0x57f   :  { %v1081_v17 = vmul.f32 %v2279_v10, %v2537_v22  ;;  %p2295_p3 = por %p2294_p2, %p2293_p1 }
 0x581   :  { %v1089_v18 = vpack.c.bf16 %v1081_v17, %v1081_v17  ;;  %p2296_p4 = pnand %p2295_p3, %p2289_p0 }
 0x590   :  { %v546_v59 = vpop.trf.xlu0 }
 0x591   :  { %v598_v60 = vpack.c.bf16 %v546_v59, %v546_v59 }
 0x593   :  { %v1279_v63 = vsel %vm1093_vm4, %v598_v60, 0 }
 0x594   :  { %v547_v2 = vpop.trf.xlu0  ;;  %2124 = vmatpush3.bf16.msra.mxu1 %v1279_v63 }
 0x595   :  { %v599_v58 = vpack.c.bf16 %v547_v2, %v547_v2  ;;  %2135 = vmatprep.subr.bf16.mxu1 %v2310_v15 }
 0x597   :  { %v1325_v5 = vsel %vm1093_vm4, %v599_v58, 0  ;;  %2126 = vmatmul.mubr.msk.bf16.vlgmr.msra.gmra.mxu1 %vm607_vm2, %v1086_v3 }
 0x598   :  { %v578_v6 = vpop.trf.xlu0  ;;  %2130 = vmatpush3.bf16.msra.mxu0 %v1325_v5  ;;  %2137 = vmatprep.mubr.msk.bf16.mxu1 %vm2311_vm1, %v2310_v15 }
 0x599   :  { %v600_v7 = vpack.c.bf16 %v578_v6, %v578_v6  ;;  %2141 = vmatprep.subr.bf16.mxu0 %v2310_v15 }
 0x59b   :  { %v1371_v11 = vsel %vm1093_vm4, %v600_v7, 0  ;;  %2132 = vmatmul.mubr.msk.bf16.vlgmr.msra.gmra.mxu0 %vm607_vm2, %v1087_v8 }
 0x59c   :  { %v579_v13 = vpop.trf.xlu0  ;;  %2136 = vmatpush3.bf16.msra.mxu1 %v1371_v11  ;;  %2143 = vmatprep.mubr.msk.bf16.mxu0 %vm2311_vm1, %v2310_v15 }
 0x59d   :  { %v601_v14 = vpack.c.bf16 %v579_v13, %v579_v13  ;;  %2147 = vmatprep.subr.bf16.mxu1 %v2310_v15 }
 0x59f   :  { %v1417_v12 = vsel %vm1093_vm4, %v601_v14, 0  ;;  %2138 = vmatmul.mubr.msk.bf16.vlgmr.msra.gmra.mxu1 %vm607_vm2, %v1088_v16 }
 0x5a0   :  { %2142 = vmatpush3.bf16.msra.mxu0 %v1417_v12  ;;  %2151 = vmatprep.mubr.msk.bf16.mxu1 %vm2311_vm1, %v2310_v15 }
 0x5a1   :  { %2155 = vmatprep.subr.bf16.mxu0 %v2310_v15  ;;  %2148 = vmatpush3.bf16.msra.mxu1 %v2232_v55 }
 0x5a2   :  { %2149 = vmatprep.subr.bf16.mxu1 %v2310_v15 }
 0x5a3   :  { %2144 = vmatmul.mubr.msk.bf16.vlgmr.msra.gmra.mxu0 %vm607_vm2, %v1089_v18 }
 0x5a4   :  { %2159 = vmatprep.mubr.msk.bf16.mxu0 %vm2311_vm1, %v2310_v15 }
 0x5a5   :  { %2150 = vmatpush3.bf16.msra.mxu1 %v2233_v61 }
 0x5a6   :  { %2163 = vmatprep.subr.bf16.mxu1 %v2310_v15 }
 0x607   :  { %v1131_v19 = vpop.f32.mrf.mxu1 }
 0x609   :  { %v2103_v20 = vpop.f32.mrf.mxu1 }
 0x60b   :  { %v1134_v21 = vpop.f32.mrf.mxu1  ;;  %v1177_v22 = vpop.f32.mrf.mxu0 }
 0x60d   :  { %v2104_v52 = vpop.f32.mrf.mxu1  ;;  %v2109_v51 = vpop.f32.mrf.mxu0 }
 0x60e   :  { %v2234_v51 = vld [vmem:[%s2684_s9 + $0x8] sm:$0xff]  }
 0x60f   :  { %v1180_v23 = vpop.f32.mrf.mxu0  ;;  %v1223_v24 = vpop.f32.mrf.mxu1  ;;  %2156 = vmatpush3.bf16.msra.mxu0 %v2234_v51 }
 0x610   :  { %v2212_v25 = vpack.i.bf16 %v1223_v24, %v1131_v19  ;;  %v2235_v23 = vld [vmem:[%s2684_s9] sm:$0xff]   ;;  %2157 = vmatprep.subr.bf16.mxu0 %v2310_v15 }
 0x611   :  { %v2110_v26 = vpop.f32.mrf.mxu0  ;;  %v2115_v27 = vpop.f32.mrf.mxu1 }
 0x612   :  { %2213 = vxpose.xlu1.b32.start [1/2] (short) (narrow) %v2212_v25, 8 }
 0x613   :  { %v1226_v28 = vpop.f32.mrf.mxu1  ;;  %v1269_v29 = vpop.f32.mrf.mxu0  ;;  %2158 = vmatpush3.bf16.msra.mxu0 %v2235_v23 }
 0x614   :  { %v2214_v30 = vpack.i.bf16 %v1269_v29, %v1177_v22 }
 0x615   :  { %v2116_v31 = vpop.f32.mrf.mxu1  ;;  %v2121_v32 = vpop.f32.mrf.mxu0 }
 0x616   :  { %2215 = vxpose.xlu1.b32.end [2/2] (short) (narrow) %v2214_v30, 8  ;;  %v1978_v32 = vld [vmem:[%s2682_s7] ss:$0 sm:$0xff] }
 0x617   :  { %v1272_v33 = vpop.f32.mrf.mxu0 }
 0x619   :  { %v2122_v53 = vpop.f32.mrf.mxu0 }
 0x657   :  { %v1315_v34 = vpop.f32.mrf.mxu1 }
 0x659   :  { %v2127_v54 = vpop.f32.mrf.mxu1 }
 0x65a   :  { %v1979_v54 = vld [vmem:[%s2683_s8] ss:$0 sm:$0xff] }
 0x65b   :  { %v1318_v35 = vpop.f32.mrf.mxu1  ;;  %v1361_v36 = vpop.f32.mrf.mxu0 }
 0x65d   :  { %v2128_v37 = vpop.f32.mrf.mxu1  ;;  %v2133_v38 = vpop.f32.mrf.mxu0 }
 0x65f   :  { %v1364_v39 = vpop.f32.mrf.mxu0  ;;  %v1407_v40 = vpop.f32.mrf.mxu1 }
 0x660   :  { %v2221_v41 = vpack.i.bf16 %v1407_v40, %v1315_v34  ;;  %v2236_v39 = vld [vmem:[%s2686_s11 + $0x38] sm:$0xff]   ;;  %v2237_v40 = vld [vmem:[%s2686_s11 + $0x30] sm:$0xff]  }
 0x661   :  { %v2134_v43 = vpop.f32.mrf.mxu0  ;;  %v2139_v44 = vpop.f32.mrf.mxu1 }
 0x662   :  { %2222 = vxpose.xlu0.b32.start [1/2] (short) (narrow) %v2221_v41, 8  ;;  %v2238_v41 = vld [vmem:[%s2686_s11 + $0x28] sm:$0xff]   ;;  %v2239_v43 = vld [vmem:[%s2686_s11 + $0x20] sm:$0xff]   ;;  %v2240_v44 = vld [vmem:[%s2686_s11 + $0x18] sm:$0xff]  }
 0x663   :  { %v1410_v46 = vpop.f32.mrf.mxu1  ;;  %v1453_v47 = vpop.f32.mrf.mxu0 }
 0x664   :  { %v2223_v48 = vpack.i.bf16 %v1453_v47, %v1361_v36  ;;  %v2241_v46 = vld [vmem:[%s2686_s11 + $0x10] sm:$0xff]   ;;  %v2242_v47 = vld [vmem:[%s2686_s11 + $0x8] sm:$0xff]  }
 0x665   :  { %v2140_v49 = vpop.f32.mrf.mxu1  ;;  %v2145_v50 = vpop.f32.mrf.mxu0 }
 0x666   :  { %2224 = vxpose.xlu0.b32.end [2/2] (short) (narrow) %v2223_v48, 8  ;;  %v2243_v48 = vld [vmem:[%s2686_s11] sm:$0xff]  }
 0x667   :  { %v1456_v42 = vpop.f32.mrf.mxu0  ;;  %v1980_v49 = vld [vmem:[%s2685_s10] ss:$0 sm:$0xff] }
 0x669   :  { %v2146_v56 = vpop.f32.mrf.mxu0 }
 0x68e   :  { %v2216_v57 = vpop.trf.xlu1 }
 0x68f   :  { %v2217_v59 = vunpack.i.l.bf16 %v2216_v57  ;;  %v2220_v60 = vunpack.i.h.bf16 %v2216_v57 }
 0x691   :  { %1587 = vxpose.xlu1.b32.start [1/4] (short) (narrow) %v2217_v59, 16 }
 0x695   :  { %1588 = vxpose.xlu1.b32.cont [2/4] (short) (narrow) %v2220_v60, 16 }
 0x6de   :  { %v2225_v45 = vpop.trf.xlu0 }
 0x6df   :  { %v2226_v63 = vunpack.i.l.bf16 %v2225_v45  ;;  %v2229_v2 = vunpack.i.h.bf16 %v2225_v45 }
 0x6e1   :  { %1589 = vxpose.xlu1.b32.cont [3/4] (short) (narrow) %v2226_v63, 16 }
 0x6e5   :  { %1590 = vxpose.xlu1.b32.end [4/4] (short) (narrow) %v2229_v2, 16 }
 0x755   :  { %v1603_v58 = vpop.trf.xlu1 }
 0x759   :  { %v1604_v3 = vpop.trf.xlu1 }
 0x75a   :  { %v1619_v62 = vpack.c.bf16 %v1604_v3, %v1603_v58 }
 0x75c   :  { %2152 = vmatmul.mubr.msk.bf16.vlgmr.msra.gmra.mxu1 %vm50_vm0, %v1619_v62 }
 0x75d   :  { %2179 = vmatprep.mubr.msk.bf16.mxu1 %vm2311_vm1, %v2310_v15  ;;  %2164 = vmatpush3.bf16.msra.mxu1 %v2236_v39 }
 0x75e   :  { %2165 = vmatprep.subr.bf16.mxu1 %v2310_v15 }
 0x761   :  { %2166 = vmatpush3.bf16.msra.mxu1 %v2237_v40 }
 0x762   :  { %2167 = vmatprep.subr.bf16.mxu1 %v2310_v15 }
 0x765   :  { %2168 = vmatpush3.bf16.msra.mxu1 %v2238_v41 }
 0x766   :  { %2169 = vmatprep.subr.bf16.mxu1 %v2310_v15 }
 0x769   :  { %2170 = vmatpush3.bf16.msra.mxu1 %v2239_v43 }
 0x76a   :  { %2171 = vmatprep.subr.bf16.mxu1 %v2310_v15 }
 0x76d   :  { %2172 = vmatpush3.bf16.msra.mxu1 %v2240_v44 }
 0x76e   :  { %2173 = vmatprep.subr.bf16.mxu1 %v2310_v15 }
 0x771   :  { %2174 = vmatpush3.bf16.msra.mxu1 %v2241_v46 }
 0x772   :  { %2175 = vmatprep.subr.bf16.mxu1 %v2310_v15 }
 0x775   :  { %2176 = vmatpush3.bf16.msra.mxu1 %v2242_v47 }
 0x776   :  { %2177 = vmatprep.subr.bf16.mxu1 %v2310_v15 }
 0x779   :  { %2178 = vmatpush3.bf16.msra.mxu1 %v2243_v48 }
 0x81c   :  { %v1680_v5 = vpop.f32.mrf.mxu1 }
 0x81d   :  { %v1681_v6 = vadd.f32 %v1974_v4, %v1680_v5 }
 0x81e   :  { %v2153_v7 = vpop.f32.mrf.mxu1 }
 0x81f   :  { %v2604_v8 = vadd.f32 %v1681_v6, %v2388_v0 }
 0x820   :  { %v1683_v9 = vpop.f32.mrf.mxu1 }
 0x821   :  { %v1684_v10 = vadd.f32 %v1974_v4, %v1683_v9  ;;  %v1691_v11 = vsel %vm50_vm0, %v2604_v8, 0.0 }
 0x822   :  { %1692 = vadd.xlane.f32.xlu0 %v1691_v11  ;;  %v2154_v13 = vpop.f32.mrf.mxu1 }
 0x823   :  { %v2609_v14 = vadd.f32 %v1684_v10, %v2393_v1 }
 0x825   :  { %v1694_v16 = vsel %vm50_vm0, %v2609_v14, 0.0 }
 0x826   :  { %1695 = vadd.xlane.f32.xlu1 %v1694_v16 }
 0x8ab   :  { %v1693_v17 = vpop.xlane.xlu0 %1692 }
 0x8ac   :  { %v1697_v12 = vmul.f32 0.03125, %v1693_v17 }
 0x8ae   :  { %v1699_v18 = vsub.f32 %v2604_v8, %v1697_v12  ;;  %v1984_v12 = vld [vmem:[%s2687_s12] ss:$0 sm:$0xff] }
 0x8af   :  { %v1696_v0 = vpop.xlane.xlu1 %1695 }
 0x8b0   :  { %v1698_v19 = vmul.f32 0.03125, %v1696_v0  ;;  %v1701_v20 = vmul.f32 %v1699_v18, %v1699_v18 }
 0x8b2   :  { %v1700_v21 = vsub.f32 %v2609_v14, %v1698_v19  ;;  %v1703_v22 = vsel %vm50_vm0, %v1701_v20, 0.0 }
 0x8b3   :  { %1704 = vadd.xlane.f32.xlu0 %v1703_v22 }
 0x8b4   :  { %v1702_v52 = vmul.f32 %v1700_v21, %v1700_v21 }
 0x8b6   :  { %v1706_v1 = vsel %vm50_vm0, %v1702_v52, 0.0 }
 0x8b7   :  { %1707 = vadd.xlane.f32.xlu0 %v1706_v1 }
 0x93c   :  { %v1705_v24 = vpop.xlane.xlu0 %1704 }
 0x93d   :  { %v1709_v25 = vmul.f32 0.03125, %v1705_v24 }
 0x93f   :  { %v1711_v26 = vadd.f32 1e-05, %v1709_v25 }
 0x940   :  { %v1708_v27 = vpop.xlane.xlu0 %1707 }
 0x941   :  { %2280 = vrsqrt.f32 %v1711_v26  ;;  %v1710_v28 = vmul.f32 0.03125, %v1708_v27 }
 0x943   :  { %v1712_v29 = vadd.f32 1e-05, %v1710_v28 }
 0x945   :  { %2282 = vrsqrt.f32 %v1712_v29 }
 0x94e   :  { %v2281_v30 = vpop.eup %2280 }
 0x94f   :  { %v1715_v31 = vmul.f32 %v2281_v30, %v1699_v18 }
 0x951   :  { %v1723_v34 = vmul.f32 %v1978_v32, %v1715_v31 }
 0x952   :  { %v2283_v33 = vpop.eup %2282 }
 0x953   :  { %v1716_v53 = vmul.f32 %v2283_v33, %v1700_v21  ;;  %v1731_v36 = vadd.f32 %v1979_v54, %v1723_v34 }
 0x955   :  { %v1724_v35 = vmul.f32 %v1978_v32, %v1716_v53 }
 0x957   :  { %v1732_v37 = vadd.f32 %v1979_v54, %v1724_v35 }
 0x959   :  { %v1733_v38 = vpack.c.bf16 %v1732_v37, %v1731_v36 }
 0x95b   :  { %2160 = vmatmul.mubr.msk.bf16.vlgmr.msra.gmra.mxu0 %vm50_vm0, %v1733_v38 }
 0xa1b   :  { %v1794_v50 = vpop.f32.mrf.mxu0 }
 0xa1c   :  { %v1795_v55 = vadd.f32 %v1980_v49, %v1794_v50 }
 0xa1d   :  { %v2161_v42 = vpop.f32.mrf.mxu0 }
 0xa1e   :  { %v1801_v56 = vmul.f32 %v1795_v55, %v1795_v55 }
 0xa1f   :  { %v1797_v57 = vpop.f32.mrf.mxu0 }
 0xa20   :  { %v1803_v59 = vmul.f32 %v1801_v56, %v1795_v55  ;;  %v1798_v60 = vadd.f32 %v1980_v49, %v1797_v57 }
 0xa21   :  { %v2162_v61 = vpop.f32.mrf.mxu0 }
 0xa22   :  { %v1805_v45 = vmul.f32 0.044715, %v1803_v59  ;;  %v1802_v63 = vmul.f32 %v1798_v60, %v1798_v60 }
 0xa24   :  { %v1807_v15 = vadd.f32 %v1805_v45, %v1795_v55  ;;  %v1804_v2 = vmul.f32 %v1802_v63, %v1798_v60 }
 0xa26   :  { %v1809_v58 = vmul.f32 0.7978846, %v1807_v15  ;;  %v1806_v3 = vmul.f32 0.044715, %v1804_v2 }
 0xa28   :  { %2284 = vtanh.f32 %v1809_v58  ;;  %v1808_v62 = vadd.f32 %v1806_v3, %v1798_v60 }
 0xa2a   :  { %v1810_v4 = vmul.f32 0.7978846, %v1808_v62 }
 0xa2c   :  { %2286 = vtanh.f32 %v1810_v4 }
 0xa35   :  { %v2285_v5 = vpop.eup %2284 }
 0xa36   :  { %v1813_v6 = vadd.f32 1.0, %v2285_v5 }
 0xa38   :  { %v1815_v9 = vmul.f32 0.5, %v1813_v6 }
 0xa39   :  { %v2287_v7 = vpop.eup %2286 }
 0xa3a   :  { %v1814_v10 = vadd.f32 1.0, %v2287_v7  ;;  %v1817_v13 = vmul.f32 %v1815_v9, %v1795_v55 }
 0xa3c   :  { %v1816_v11 = vmul.f32 0.5, %v1814_v10 }
 0xa3e   :  { %v1818_v16 = vmul.f32 %v1816_v11, %v1798_v60 }
 0xa40   :  { %v1819_v17 = vpack.c.bf16 %v1818_v16, %v1817_v13 }
 0xa42   :  { %2180 = vmatmul.mubr.bf16.vlgmr.msra.gmra.mxu1 %v1819_v17 }
 0xb02   :  { %v1925_v18 = vpop.f32.mrf.mxu1 }
 0xb03   :  { %v1926_v0 = vadd.f32 %v1984_v12, %v1925_v18 }
 0xb04   :  { %v2181_v19 = vpop.f32.mrf.mxu1 }
 0xb05   :  { %v1932_v20 = vadd.f32 %v1926_v0, %v2604_v8 }
 0xb06   :  { %v1928_v21 = vpop.f32.mrf.mxu1 }
 0xb07   :  { %1934 = vst.msk [vmem:[#allocation2] sm:$0xff] %vm50_vm0, %v1932_v20  ;;  %v1929_v22 = vadd.f32 %v1984_v12, %v1928_v21 }
 0xb08   :  { %v2182_v52 = vpop.f32.mrf.mxu1 }
 0xb09   :  { %v1933_v1 = vadd.f32 %v1929_v22, %v2609_v14 }
 0xb0b   :  { %1935 = vst.msk [vmem:[#allocation2 + $0x8] sm:$0xff] %vm50_vm0, %v1933_v1 }
 0xb0c   :  { %2299 = shalt.err (!%p2296_p4)
}
 0xb0d   :  { %s2313_s12 = smov 128   ;;  %s2314_s23 = smov 8  }
 0xb0e   :  { %1947 = dma.vmem_to_hbm [thread:$0]  %s1942_s5, 256, %s2688_s13, [#allocation3], %s2313_s12, %s2313_s12, %s2314_s23  }
 0xb0f   :  { %2308 = dma.done.wait [#allocation3], 256  }
 0xb10   :  { %2309 = vsyncadd [#allocation3], 4294967040 }
 0xb11   :  { %1951 = vsyncpa [#allocation3], 1 }

</bundles_post_ra>
